<compile_context>
chip_gen: v7x
topology: tpu7x:2x2x1
jax: 0.10.0
libtpu: 0.0.40
codegen_flags: <defaults>
</compile_context>

<pallas_src>
import jax
import jax.numpy as jnp
from jax import lax
from jax.experimental import pallas as pl
from jax.experimental.pallas import tpu as pltpu
import numpy as np

# Small synthetic model config.
B, T, H = 2, 16, 128        # batch, seq, hidden
NH, HD = 2, 64              # heads, head dim
BT = B * T
assert NH * HD == H


# ----------------------------------------------------------------------------
# Fused kernel: teacher attention + student (chunked RWKV6-style) + loss.
# Whole batch in one invocation; rows are (b*T + t).
# ----------------------------------------------------------------------------
def _fused_distill_kernel(x_ref, wq_ref, wk_ref, wv_ref, wo_ref,
                          dec_r_ref, dec_k_ref, u_ref,
                          teacher_ref, loss_ref):
    xb = x_ref[...]                                  # [BT, H] bf16

    # Shared projections (student's r/k/v weights are copies of teacher's q/k/v).
    q = jnp.dot(xb, wq_ref[...], preferred_element_type=jnp.float32)   # [BT, H] f32
    k = jnp.dot(xb, wk_ref[...], preferred_element_type=jnp.float32)
    v = jnp.dot(xb, wv_ref[...], preferred_element_type=jnp.float32)

    dec_r = dec_r_ref[...]                           # [BT, H] f32  r-side decay
    dec_k = dec_k_ref[...]                           # [BT, H] f32  k-side decay
    u = u_ref[...]                                   # [1, H]  f32  bonus
    # TODO(synk): full RWKV6 uses data-dependent (LoRA-modulated) decay, token
    # shift, an output gate and group-norm; a static per-channel decay is used here.

    # Block-diagonal masks over the folded batch (no vector integer division).
    rows = lax.broadcasted_iota(jnp.int32, (BT, BT), 0)
    cols = lax.broadcasted_iota(jnp.int32, (BT, BT), 1)
    same = None
    for b in range(B):                               # static unroll, B tiny
        in_r = (rows >= b * T) & (rows < (b + 1) * T)
        in_c = (cols >= b * T) & (cols < (b + 1) * T)
        blk = in_r & in_c
        same = blk if same is None else (same | blk)
    causal = same & (cols <= rows)
    strict = same & (cols < rows)

    scale = HD ** -0.5
    dn = (((1,), (1,)), ((), ()))                    # contract last dims: a @ b.T

    ctx_heads = []
    y_heads = []
    for h in range(NH):                              # static unroll; lane-sliced heads
        sl = slice(h * HD, (h + 1) * HD)
        qh, kh, vh = q[:, sl], k[:, sl], v[:, sl]    # [BT, HD] f32
        vh_b = vh.astype(jnp.bfloat16)

        # ---- teacher head: causal softmax attention ----
        s = lax.dot_general((qh * scale).astype(jnp.bfloat16),
                            kh.astype(jnp.bfloat16), dn,
                            preferred_element_type=jnp.float32)          # [BT, BT]
        s = jnp.where(causal, s, -1e30)
        m = jnp.max(s, axis=-1, keepdims=True)
        e = jnp.exp(s - m)
        den = jnp.sum(e, axis=-1, keepdims=True)
        p = e * pl.reciprocal(den, approx=True)                          # EUP divide
        ctx_heads.append(jnp.dot(p.astype(jnp.bfloat16), vh_b,
                                 preferred_element_type=jnp.float32))    # [BT, HD]

        # ---- student head: RWKV6-style linear attention, chunked (1 chunk) ----
        #   y_t = sum_{s<t} (sum_i r_t[i] k_s[i] w[i]^{t-1-s}) v_s
        #         + (sum_i r_t[i] u[i] k_t[i]) v_t
        # dec_r/dec_k carry the centered exponents w^(t-c) / w^(c-1-s).
        # TODO(synk): centered exponents overflow for long chunks; use a
        # per-chunk cumulative-decay formulation for real sequence lengths.
        r_dec = (qh * dec_r[:, sl]).astype(jnp.bfloat16)
        k_dec = (kh * dec_k[:, sl]).astype(jnp.bfloat16)
        A = lax.dot_general(r_dec, k_dec, dn,
                            preferred_element_type=jnp.float32)          # [BT, BT]
        A = jnp.where(strict, A, 0.0)                # keep s<t within same batch
        bonus = jnp.sum(qh * u[:, sl] * kh, axis=-1, keepdims=True)      # [BT, 1]
        yh = jnp.dot(A.astype(jnp.bfloat16), vh_b,
                     preferred_element_type=jnp.float32) + bonus * vh
        y_heads.append(yh)

    # Single full-width output projection per path (heads lane-concatenated).
    wo = wo_ref[...]                                 # [H, H] bf16
    ctx_all = jnp.concatenate(ctx_heads, axis=-1).astype(jnp.bfloat16)   # [BT, H]
    teacher_out = jnp.dot(ctx_all, wo, preferred_element_type=jnp.float32)
    y_all = jnp.concatenate(y_heads, axis=-1).astype(jnp.bfloat16)
    student_out = jnp.dot(y_all, wo, preferred_element_type=jnp.float32)

    teacher_ref[...] = teacher_out

    # Student output never leaves VMEM; loss fully reduced in-kernel -> (1,1).
    diff = teacher_out - student_out                 # [BT, H]
    # TODO(synk): add an eps inside sqrt if this ever needs to be differentiated.
    row_norm = jnp.sqrt(jnp.sum(diff * diff, axis=-1, keepdims=True))    # [BT, 1]
    loss_ref[...] = (jnp.sum(row_norm, axis=0, keepdims=True)
                     * (1.0 / BT) * (H ** -0.5))                         # [1, 1]


def _fused_call(x, wq, wk, wv, wo, w_decay, u):
    # Fold batch: [B, T, H] -> [B*T, H]; cast x / weights to bf16 for the MXU.
    xb = x.reshape(BT, H).astype(jnp.bfloat16)
    wqb = wq.astype(jnp.bfloat16)
    wkb = wk.astype(jnp.bfloat16)
    wvb = wv.astype(jnp.bfloat16)
    wob = wo.astype(jnp.bfloat16)

    # Parameter-only math hoisted out of the kernel. Per-head params flattened
    # lane-dense to [1, H] (head h -> cols h*HD:(h+1)*HD); decay matrices use
    # centered exponents so no overflow at this T.
    logw = -jnp.exp(w_decay.reshape(1, H))           # [1, H]; w = exp(logw) in (0,1)
    t_pos = jnp.arange(T, dtype=jnp.float32)[:, None]
    c = float(T // 2)
    dec_r = jnp.tile(jnp.exp((t_pos - c) * logw), (B, 1))        # [BT, H]
    dec_k = jnp.tile(jnp.exp((c - 1.0 - t_pos) * logw), (B, 1))  # [BT, H]
    u2 = u.reshape(1, H)

    teacher_flat, loss11 = pl.pallas_call(
        _fused_distill_kernel,
        out_shape=(jax.ShapeDtypeStruct((BT, H), jnp.float32),
                   jax.ShapeDtypeStruct((1, 1), jnp.float32)),
        grid=(1,),
        in_specs=[
            pl.BlockSpec((BT, H), lambda i: (0, 0)),   # x (bf16)
            pl.BlockSpec((H, H), lambda i: (0, 0)),    # wq (bf16)
            pl.BlockSpec((H, H), lambda i: (0, 0)),    # wk (bf16)
            pl.BlockSpec((H, H), lambda i: (0, 0)),    # wv (bf16)
            pl.BlockSpec((H, H), lambda i: (0, 0)),    # wo (bf16)
            pl.BlockSpec((BT, H), lambda i: (0, 0)),   # dec_r (f32)
            pl.BlockSpec((BT, H), lambda i: (0, 0)),   # dec_k (f32)
            pl.BlockSpec((1, H), lambda i: (0, 0)),    # u (f32)
        ],
        out_specs=(pl.BlockSpec((BT, H), lambda i: (0, 0)),
                   pl.BlockSpec((1, 1), lambda i: (0, 0))),
        compiler_params=pltpu.CompilerParams(dimension_semantics=("arbitrary",)),
    )(xb, wqb, wkb, wvb, wob, dec_r, dec_k, u2)

    return teacher_flat.reshape(B, T, H), loss11[0, 0]


# ----------------------------------------------------------------------------
# Wrapper forward == AttentionDistillationWrapper.forward (stage 2)
# ----------------------------------------------------------------------------
def attention_distillation_forward(hidden_states, params):
    teacher_h, loss = _fused_call(hidden_states, params["wq"], params["wk"],
                                  params["wv"], params["wo"],
                                  params["w_decay"], params["u"])
    return teacher_h, loss


# ----------------------------------------------------------------------------
# Pure-JAX references (for a sanity check)
# ----------------------------------------------------------------------------
def _teacher_ref(x, wq, wk, wv, wo):
    q = (x @ wq).reshape(B, T, NH, HD)
    k = (x @ wk).reshape(B, T, NH, HD)
    v = (x @ wv).reshape(B, T, NH, HD)
    s = jnp.einsum("btnd,bsnd->bnts", q, k) / (HD ** 0.5)
    mask = jnp.tril(jnp.ones((T, T), bool))
    s = jnp.where(mask[None, None], s, -1e30)
    p = jax.nn.softmax(s, axis=-1)
    ctx = jnp.einsum("bnts,bsnd->btnd", p, v).reshape(B, T, H)
    return ctx @ wo


def _student_ref(x, wr, wk, wv, wo, w_decay, u):
    r = (x @ wr).reshape(B, T, NH, HD)
    k = (x @ wk).reshape(B, T, NH, HD)
    v = (x @ wv).reshape(B, T, NH, HD)
    w = jnp.exp(-jnp.exp(w_decay))

    def step(state, inp):
        r_t, k_t, v_t = inp                                          # [B, NH, HD]
        y = (jnp.einsum("bni,bnij->bnj", r_t, state)
             + jnp.sum(r_t * u[None] * k_t, -1, keepdims=True) * v_t)
        state = w[None, :, :, None] * state + k_t[..., :, None] * v_t[..., None, :]
        return state, y

    xs = (r.transpose(1, 0, 2, 3), k.transpose(1, 0, 2, 3), v.transpose(1, 0, 2, 3))
    _, ys = lax.scan(step, jnp.zeros((B, NH, HD, HD), jnp.float32), xs)
    ys = ys.transpose(1, 0, 2, 3).reshape(B, T, H)
    return ys @ wo


if __name__ == "__main__":
    key = jax.random.PRNGKey(0)
    ks = jax.random.split(key, 7)
    params = {
        "wq": jax.random.normal(ks[0], (H, H), jnp.float32) * 0.02,
        "wk": jax.random.normal(ks[1], (H, H), jnp.float32) * 0.02,
        "wv": jax.random.normal(ks[2], (H, H), jnp.float32) * 0.02,
        "wo": jax.random.normal(ks[3], (H, H), jnp.float32) * 0.02,
        "w_decay": jax.random.normal(ks[4], (NH, HD), jnp.float32) * 0.5,
        "u": jax.random.normal(ks[5], (NH, HD), jnp.float32) * 0.5,
    }
    x = jax.random.normal(ks[6], (B, T, H), jnp.float32)

    teacher_h, loss = jax.jit(attention_distillation_forward)(x, params)
    jax.block_until_ready((teacher_h, loss))

    # Correctness check against pure-JAX (f32) reference; tolerances account for
    # bf16 MXU operands with f32 accumulation.
    t_ref = _teacher_ref(x, params["wq"], params["wk"], params["wv"], params["wo"])
    s_ref = _student_ref(x, params["wq"], params["wk"], params["wv"], params["wo"],
                         params["w_decay"], params["u"])
    loss_ref = jnp.mean(jnp.linalg.norm(t_ref - s_ref, axis=-1)) * (H ** -0.5)
    np.testing.assert_allclose(np.asarray(teacher_h), np.asarray(t_ref),
                               rtol=3e-2, atol=3e-3)
    np.testing.assert_allclose(float(loss), float(loss_ref), rtol=5e-2, atol=1e-3)

    print("KERNEL_OK")
</pallas_src>

<mosaic_0001>
module attributes {stable_mosaic.version = 11 : i64} {
  func.func @_fused_distill_kernel(%arg0: i32, %arg1: memref<32x128xbf16, #tpu.memory_space<vmem>>, %arg2: memref<128x128xbf16, #tpu.memory_space<vmem>>, %arg3: memref<128x128xbf16, #tpu.memory_space<vmem>>, %arg4: memref<128x128xbf16, #tpu.memory_space<vmem>>, %arg5: memref<128x128xbf16, #tpu.memory_space<vmem>>, %arg6: memref<32x128xf32, #tpu.memory_space<vmem>>, %arg7: memref<32x128xf32, #tpu.memory_space<vmem>>, %arg8: memref<1x128xf32, #tpu.memory_space<vmem>>, %arg9: memref<32x128xf32, #tpu.memory_space<vmem>>, %arg10: memref<1x1xf32, #tpu.memory_space<vmem>>) attributes {dimension_semantics = [#tpu.dimension_semantics<arbitrary>], iteration_bounds = array<i64: 1>, scalar_prefetch = 0 : i64, scratch_operands = 0 : i64, tpu.core_type = #tpu.core_type<tc>, window_params = [{pipeline_mode = #tpu.pipeline_mode<synchronous>, transform_indices = @transform_0, window_bounds = array<i64: 32, 128>}, {pipeline_mode = #tpu.pipeline_mode<synchronous>, transform_indices = @transform_1, window_bounds = array<i64: 128, 128>}, {pipeline_mode = #tpu.pipeline_mode<synchronous>, transform_indices = @transform_2, window_bounds = array<i64: 128, 128>}, {pipeline_mode = #tpu.pipeline_mode<synchronous>, transform_indices = @transform_3, window_bounds = array<i64: 128, 128>}, {pipeline_mode = #tpu.pipeline_mode<synchronous>, transform_indices = @transform_4, window_bounds = array<i64: 128, 128>}, {pipeline_mode = #tpu.pipeline_mode<synchronous>, transform_indices = @transform_5, window_bounds = array<i64: 32, 128>}, {pipeline_mode = #tpu.pipeline_mode<synchronous>, transform_indices = @transform_6, window_bounds = array<i64: 32, 128>}, {pipeline_mode = #tpu.pipeline_mode<synchronous>, transform_indices = @transform_7, window_bounds = array<i64: 1, 128>}, {pipeline_mode = #tpu.pipeline_mode<synchronous>, transform_indices = @transform_8, window_bounds = array<i64: 32, 128>}, {pipeline_mode = #tpu.pipeline_mode<synchronous>, transform_indices = @transform_9, window_bounds = array<i64: 1, 1>}]} {
    %c0 = arith.constant 0 : index
    %c0_0 = arith.constant 0 : index
    %0 = vector.load %arg1[%c0, %c0_0] : memref<32x128xbf16, #tpu.memory_space<vmem>>, vector<32x128xbf16>
    %c0_1 = arith.constant 0 : index
    %c0_2 = arith.constant 0 : index
    %1 = vector.load %arg2[%c0_1, %c0_2] : memref<128x128xbf16, #tpu.memory_space<vmem>>, vector<128x128xbf16>
    %cst = arith.constant dense<0.000000e+00> : vector<32x128xf32>
    %2 = tpu.matmul %0, %1, %cst {dimension_numbers = #tpu.dot_dimension_numbers<[1], [0], [0], [1], [0, 0, 1, 1], [], []>} : vector<32x128xbf16>, vector<128x128xbf16>, vector<32x128xf32> -> vector<32x128xf32>
    %c0_3 = arith.constant 0 : index
    %c0_4 = arith.constant 0 : index
    %3 = vector.load %arg3[%c0_3, %c0_4] : memref<128x128xbf16, #tpu.memory_space<vmem>>, vector<128x128xbf16>
    %cst_5 = arith.constant dense<0.000000e+00> : vector<32x128xf32>
    %4 = tpu.matmul %0, %3, %cst_5 {dimension_numbers = #tpu.dot_dimension_numbers<[1], [0], [0], [1], [0, 0, 1, 1], [], []>} : vector<32x128xbf16>, vector<128x128xbf16>, vector<32x128xf32> -> vector<32x128xf32>
    %c0_6 = arith.constant 0 : index
    %c0_7 = arith.constant 0 : index
    %5 = vector.load %arg4[%c0_6, %c0_7] : memref<128x128xbf16, #tpu.memory_space<vmem>>, vector<128x128xbf16>
    %cst_8 = arith.constant dense<0.000000e+00> : vector<32x128xf32>
    %6 = tpu.matmul %0, %5, %cst_8 {dimension_numbers = #tpu.dot_dimension_numbers<[1], [0], [0], [1], [0, 0, 1, 1], [], []>} : vector<32x128xbf16>, vector<128x128xbf16>, vector<32x128xf32> -> vector<32x128xf32>
    %c0_9 = arith.constant 0 : index
    %c0_10 = arith.constant 0 : index
    %7 = vector.load %arg6[%c0_9, %c0_10] : memref<32x128xf32, #tpu.memory_space<vmem>>, vector<32x128xf32>
    %c0_11 = arith.constant 0 : index
    %c0_12 = arith.constant 0 : index
    %8 = vector.load %arg7[%c0_11, %c0_12] : memref<32x128xf32, #tpu.memory_space<vmem>>, vector<32x128xf32>
    %c0_13 = arith.constant 0 : index
    %c0_14 = arith.constant 0 : index
    %9 = vector.load %arg8[%c0_13, %c0_14] : memref<1x128xf32, #tpu.memory_space<vmem>>, vector<1x128xf32>
    %10 = tpu.iota {dimensions = array<i32: 0>} : vector<32x32xi32>
    %11 = tpu.iota {dimensions = array<i32: 1>} : vector<32x32xi32>
    %c0_i32 = arith.constant 0 : i32
    %12 = vector.broadcast %c0_i32 : i32 to vector<32x32xi32>
    %13 = arith.cmpi sge, %10, %12 : vector<32x32xi32>
    %c16_i32 = arith.constant 16 : i32
    %14 = vector.broadcast %c16_i32 : i32 to vector<32x32xi32>
    %15 = arith.cmpi slt, %10, %14 : vector<32x32xi32>
    %16 = arith.andi %13, %15 : vector<32x32xi1>
    %c0_i32_15 = arith.constant 0 : i32
    %17 = vector.broadcast %c0_i32_15 : i32 to vector<32x32xi32>
    %18 = arith.cmpi sge, %11, %17 : vector<32x32xi32>
    %c16_i32_16 = arith.constant 16 : i32
    %19 = vector.broadcast %c16_i32_16 : i32 to vector<32x32xi32>
    %20 = arith.cmpi slt, %11, %19 : vector<32x32xi32>
    %21 = arith.andi %18, %20 : vector<32x32xi1>
    %22 = arith.andi %16, %21 : vector<32x32xi1>
    %c16_i32_17 = arith.constant 16 : i32
    %23 = vector.broadcast %c16_i32_17 : i32 to vector<32x32xi32>
    %24 = arith.cmpi sge, %10, %23 : vector<32x32xi32>
    %c32_i32 = arith.constant 32 : i32
    %25 = vector.broadcast %c32_i32 : i32 to vector<32x32xi32>
    %26 = arith.cmpi slt, %10, %25 : vector<32x32xi32>
    %27 = arith.andi %24, %26 : vector<32x32xi1>
    %c16_i32_18 = arith.constant 16 : i32
    %28 = vector.broadcast %c16_i32_18 : i32 to vector<32x32xi32>
    %29 = arith.cmpi sge, %11, %28 : vector<32x32xi32>
    %c32_i32_19 = arith.constant 32 : i32
    %30 = vector.broadcast %c32_i32_19 : i32 to vector<32x32xi32>
    %31 = arith.cmpi slt, %11, %30 : vector<32x32xi32>
    %32 = arith.andi %29, %31 : vector<32x32xi1>
    %33 = arith.andi %27, %32 : vector<32x32xi1>
    %34 = arith.ori %22, %33 : vector<32x32xi1>
    %35 = arith.cmpi sle, %11, %10 : vector<32x32xi32>
    %36 = arith.andi %34, %35 : vector<32x32xi1>
    %37 = arith.cmpi slt, %11, %10 : vector<32x32xi32>
    %38 = arith.andi %34, %37 : vector<32x32xi1>
    %39 = vector.extract_strided_slice %2 {offsets = [0, 0], sizes = [32, 64], strides = [1, 1]} : vector<32x128xf32> to vector<32x64xf32>
    %40 = vector.extract_strided_slice %4 {offsets = [0, 0], sizes = [32, 64], strides = [1, 1]} : vector<32x128xf32> to vector<32x64xf32>
    %41 = vector.extract_strided_slice %6 {offsets = [0, 0], sizes = [32, 64], strides = [1, 1]} : vector<32x128xf32> to vector<32x64xf32>
    %42 = arith.truncf %41 : vector<32x64xf32> to vector<32x64xbf16>
    %cst_20 = arith.constant 1.250000e-01 : f32
    %43 = vector.broadcast %cst_20 : f32 to vector<32x64xf32>
    %44 = arith.mulf %39, %43 : vector<32x64xf32>
    %45 = arith.truncf %44 : vector<32x64xf32> to vector<32x64xbf16>
    %46 = arith.truncf %40 : vector<32x64xf32> to vector<32x64xbf16>
    %cst_21 = arith.constant dense<0.000000e+00> : vector<32x32xf32>
    %47 = tpu.matmul %45, %46, %cst_21 {dimension_numbers = #tpu.dot_dimension_numbers<[1], [1], [0], [0], [0, 0, 1, 0], [], []>} : vector<32x64xbf16>, vector<32x64xbf16>, vector<32x32xf32> -> vector<32x32xf32>
    %cst_22 = arith.constant -1.000000e+30 : f32
    %48 = vector.broadcast %cst_22 : f32 to vector<32x32xf32>
    %49 = arith.select %36, %47, %48 : vector<32x32xi1>, vector<32x32xf32>
    %cst_23 = arith.constant dense<0xFF800000> : vector<32xf32>
    %50 = vector.multi_reduction <maximumf>, %49, %cst_23 [1] : vector<32x32xf32> to vector<32xf32>
    %51 = vector.shape_cast %50 : vector<32xf32> to vector<32x1xf32>
    %52 = vector.broadcast %51 : vector<32x1xf32> to vector<32x32xf32>
    %53 = arith.subf %49, %52 : vector<32x32xf32>
    %54 = math.exp %53 : vector<32x32xf32>
    %cst_24 = arith.constant dense<0.000000e+00> : vector<32xf32>
    %55 = vector.multi_reduction <add>, %54, %cst_24 [1] : vector<32x32xf32> to vector<32xf32>
    %56 = vector.shape_cast %55 : vector<32xf32> to vector<32x1xf32>
    %57 = tpu.reciprocal %56 {approx = true} : vector<32x1xf32> -> vector<32x1xf32>
    %58 = vector.broadcast %57 : vector<32x1xf32> to vector<32x32xf32>
    %59 = arith.mulf %54, %58 : vector<32x32xf32>
    %60 = arith.truncf %59 : vector<32x32xf32> to vector<32x32xbf16>
    %cst_25 = arith.constant dense<0.000000e+00> : vector<32x64xf32>
    %61 = tpu.matmul %60, %42, %cst_25 {dimension_numbers = #tpu.dot_dimension_numbers<[1], [0], [0], [1], [0, 0, 1, 1], [], []>} : vector<32x32xbf16>, vector<32x64xbf16>, vector<32x64xf32> -> vector<32x64xf32>
    %62 = vector.extract_strided_slice %7 {offsets = [0, 0], sizes = [32, 64], strides = [1, 1]} : vector<32x128xf32> to vector<32x64xf32>
    %63 = arith.mulf %39, %62 : vector<32x64xf32>
    %64 = arith.truncf %63 : vector<32x64xf32> to vector<32x64xbf16>
    %65 = vector.extract_strided_slice %8 {offsets = [0, 0], sizes = [32, 64], strides = [1, 1]} : vector<32x128xf32> to vector<32x64xf32>
    %66 = arith.mulf %40, %65 : vector<32x64xf32>
    %67 = arith.truncf %66 : vector<32x64xf32> to vector<32x64xbf16>
    %cst_26 = arith.constant dense<0.000000e+00> : vector<32x32xf32>
    %68 = tpu.matmul %64, %67, %cst_26 {dimension_numbers = #tpu.dot_dimension_numbers<[1], [1], [0], [0], [0, 0, 1, 0], [], []>} : vector<32x64xbf16>, vector<32x64xbf16>, vector<32x32xf32> -> vector<32x32xf32>
    %cst_27 = arith.constant 0.000000e+00 : f32
    %69 = vector.broadcast %cst_27 : f32 to vector<32x32xf32>
    %70 = arith.select %38, %68, %69 : vector<32x32xi1>, vector<32x32xf32>
    %71 = vector.extract_strided_slice %9 {offsets = [0, 0], sizes = [1, 64], strides = [1, 1]} : vector<1x128xf32> to vector<1x64xf32>
    %72 = vector.broadcast %71 : vector<1x64xf32> to vector<32x64xf32>
    %73 = arith.mulf %39, %72 : vector<32x64xf32>
    %74 = arith.mulf %73, %40 : vector<32x64xf32>
    %cst_28 = arith.constant dense<0.000000e+00> : vector<32xf32>
    %75 = vector.multi_reduction <add>, %74, %cst_28 [1] : vector<32x64xf32> to vector<32xf32>
    %76 = vector.shape_cast %75 : vector<32xf32> to vector<32x1xf32>
    %77 = arith.truncf %70 : vector<32x32xf32> to vector<32x32xbf16>
    %cst_29 = arith.constant dense<0.000000e+00> : vector<32x64xf32>
    %78 = tpu.matmul %77, %42, %cst_29 {dimension_numbers = #tpu.dot_dimension_numbers<[1], [0], [0], [1], [0, 0, 1, 1], [], []>} : vector<32x32xbf16>, vector<32x64xbf16>, vector<32x64xf32> -> vector<32x64xf32>
    %79 = vector.broadcast %76 : vector<32x1xf32> to vector<32x64xf32>
    %80 = arith.mulf %79, %41 : vector<32x64xf32>
    %81 = arith.addf %78, %80 : vector<32x64xf32>
    %82 = vector.extract_strided_slice %2 {offsets = [0, 64], sizes = [32, 64], strides = [1, 1]} : vector<32x128xf32> to vector<32x64xf32>
    %83 = vector.extract_strided_slice %4 {offsets = [0, 64], sizes = [32, 64], strides = [1, 1]} : vector<32x128xf32> to vector<32x64xf32>
    %84 = vector.extract_strided_slice %6 {offsets = [0, 64], sizes = [32, 64], strides = [1, 1]} : vector<32x128xf32> to vector<32x64xf32>
    %85 = arith.truncf %84 : vector<32x64xf32> to vector<32x64xbf16>
    %cst_30 = arith.constant 1.250000e-01 : f32
    %86 = vector.broadcast %cst_30 : f32 to vector<32x64xf32>
    %87 = arith.mulf %82, %86 : vector<32x64xf32>
    %88 = arith.truncf %87 : vector<32x64xf32> to vector<32x64xbf16>
    %89 = arith.truncf %83 : vector<32x64xf32> to vector<32x64xbf16>
    %cst_31 = arith.constant dense<0.000000e+00> : vector<32x32xf32>
    %90 = tpu.matmul %88, %89, %cst_31 {dimension_numbers = #tpu.dot_dimension_numbers<[1], [1], [0], [0], [0, 0, 1, 0], [], []>} : vector<32x64xbf16>, vector<32x64xbf16>, vector<32x32xf32> -> vector<32x32xf32>
    %cst_32 = arith.constant -1.000000e+30 : f32
    %91 = vector.broadcast %cst_32 : f32 to vector<32x32xf32>
    %92 = arith.select %36, %90, %91 : vector<32x32xi1>, vector<32x32xf32>
    %cst_33 = arith.constant dense<0xFF800000> : vector<32xf32>
    %93 = vector.multi_reduction <maximumf>, %92, %cst_33 [1] : vector<32x32xf32> to vector<32xf32>
    %94 = vector.shape_cast %93 : vector<32xf32> to vector<32x1xf32>
    %95 = vector.broadcast %94 : vector<32x1xf32> to vector<32x32xf32>
    %96 = arith.subf %92, %95 : vector<32x32xf32>
    %97 = math.exp %96 : vector<32x32xf32>
    %cst_34 = arith.constant dense<0.000000e+00> : vector<32xf32>
    %98 = vector.multi_reduction <add>, %97, %cst_34 [1] : vector<32x32xf32> to vector<32xf32>
    %99 = vector.shape_cast %98 : vector<32xf32> to vector<32x1xf32>
    %100 = tpu.reciprocal %99 {approx = true} : vector<32x1xf32> -> vector<32x1xf32>
    %101 = vector.broadcast %100 : vector<32x1xf32> to vector<32x32xf32>
    %102 = arith.mulf %97, %101 : vector<32x32xf32>
    %103 = arith.truncf %102 : vector<32x32xf32> to vector<32x32xbf16>
    %cst_35 = arith.constant dense<0.000000e+00> : vector<32x64xf32>
    %104 = tpu.matmul %103, %85, %cst_35 {dimension_numbers = #tpu.dot_dimension_numbers<[1], [0], [0], [1], [0, 0, 1, 1], [], []>} : vector<32x32xbf16>, vector<32x64xbf16>, vector<32x64xf32> -> vector<32x64xf32>
    %105 = vector.extract_strided_slice %7 {offsets = [0, 64], sizes = [32, 64], strides = [1, 1]} : vector<32x128xf32> to vector<32x64xf32>
    %106 = arith.mulf %82, %105 : vector<32x64xf32>
    %107 = arith.truncf %106 : vector<32x64xf32> to vector<32x64xbf16>
    %108 = vector.extract_strided_slice %8 {offsets = [0, 64], sizes = [32, 64], strides = [1, 1]} : vector<32x128xf32> to vector<32x64xf32>
    %109 = arith.mulf %83, %108 : vector<32x64xf32>
    %110 = arith.truncf %109 : vector<32x64xf32> to vector<32x64xbf16>
    %cst_36 = arith.constant dense<0.000000e+00> : vector<32x32xf32>
    %111 = tpu.matmul %107, %110, %cst_36 {dimension_numbers = #tpu.dot_dimension_numbers<[1], [1], [0], [0], [0, 0, 1, 0], [], []>} : vector<32x64xbf16>, vector<32x64xbf16>, vector<32x32xf32> -> vector<32x32xf32>
    %cst_37 = arith.constant 0.000000e+00 : f32
    %112 = vector.broadcast %cst_37 : f32 to vector<32x32xf32>
    %113 = arith.select %38, %111, %112 : vector<32x32xi1>, vector<32x32xf32>
    %114 = vector.extract_strided_slice %9 {offsets = [0, 64], sizes = [1, 64], strides = [1, 1]} : vector<1x128xf32> to vector<1x64xf32>
    %115 = vector.broadcast %114 : vector<1x64xf32> to vector<32x64xf32>
    %116 = arith.mulf %82, %115 : vector<32x64xf32>
    %117 = arith.mulf %116, %83 : vector<32x64xf32>
    %cst_38 = arith.constant dense<0.000000e+00> : vector<32xf32>
    %118 = vector.multi_reduction <add>, %117, %cst_38 [1] : vector<32x64xf32> to vector<32xf32>
    %119 = vector.shape_cast %118 : vector<32xf32> to vector<32x1xf32>
    %120 = arith.truncf %113 : vector<32x32xf32> to vector<32x32xbf16>
    %cst_39 = arith.constant dense<0.000000e+00> : vector<32x64xf32>
    %121 = tpu.matmul %120, %85, %cst_39 {dimension_numbers = #tpu.dot_dimension_numbers<[1], [0], [0], [1], [0, 0, 1, 1], [], []>} : vector<32x32xbf16>, vector<32x64xbf16>, vector<32x64xf32> -> vector<32x64xf32>
    %122 = vector.broadcast %119 : vector<32x1xf32> to vector<32x64xf32>
    %123 = arith.mulf %122, %84 : vector<32x64xf32>
    %124 = arith.addf %121, %123 : vector<32x64xf32>
    %c0_40 = arith.constant 0 : index
    %c0_41 = arith.constant 0 : index
    %125 = vector.load %arg5[%c0_40, %c0_41] : memref<128x128xbf16, #tpu.memory_space<vmem>>, vector<128x128xbf16>
    %126 = tpu.concatenate %61, %104 in 1 : vector<32x64xf32>, vector<32x64xf32> -> vector<32x128xf32>
    %127 = arith.truncf %126 : vector<32x128xf32> to vector<32x128xbf16>
    %cst_42 = arith.constant dense<0.000000e+00> : vector<32x128xf32>
    %128 = tpu.matmul %127, %125, %cst_42 {dimension_numbers = #tpu.dot_dimension_numbers<[1], [0], [0], [1], [0, 0, 1, 1], [], []>} : vector<32x128xbf16>, vector<128x128xbf16>, vector<32x128xf32> -> vector<32x128xf32>
    %129 = tpu.concatenate %81, %124 in 1 : vector<32x64xf32>, vector<32x64xf32> -> vector<32x128xf32>
    %130 = arith.truncf %129 : vector<32x128xf32> to vector<32x128xbf16>
    %cst_43 = arith.constant dense<0.000000e+00> : vector<32x128xf32>
    %131 = tpu.matmul %130, %125, %cst_43 {dimension_numbers = #tpu.dot_dimension_numbers<[1], [0], [0], [1], [0, 0, 1, 1], [], []>} : vector<32x128xbf16>, vector<128x128xbf16>, vector<32x128xf32> -> vector<32x128xf32>
    %c0_44 = arith.constant 0 : index
    %c0_45 = arith.constant 0 : index
    %132 = vector.load %arg9[%c0_44, %c0_45] : memref<32x128xf32, #tpu.memory_space<vmem>>, vector<32x128xf32>
    tpu.vector_store %arg9[%c0_44, %c0_45], %128 {strides = array<i32>} : memref<32x128xf32, #tpu.memory_space<vmem>>, vector<32x128xf32>,
    %133 = arith.subf %128, %131 : vector<32x128xf32>
    %134 = arith.mulf %133, %133 : vector<32x128xf32>
    %cst_46 = arith.constant dense<0.000000e+00> : vector<32xf32>
    %135 = vector.multi_reduction <add>, %134, %cst_46 [1] : vector<32x128xf32> to vector<32xf32>
    %136 = vector.shape_cast %135 : vector<32xf32> to vector<32x1xf32>
    %137 = math.sqrt %136 : vector<32x1xf32>
    %cst_47 = arith.constant dense<0.000000e+00> : vector<1xf32>
    %138 = vector.multi_reduction <add>, %137, %cst_47 [0] : vector<32x1xf32> to vector<1xf32>
    %139 = vector.shape_cast %138 : vector<1xf32> to vector<1x1xf32>
    %cst_48 = arith.constant 3.125000e-02 : f32
    %140 = vector.broadcast %cst_48 : f32 to vector<1x1xf32>
    %141 = arith.mulf %139, %140 : vector<1x1xf32>
    %cst_49 = arith.constant 0.0883883461 : f32
    %142 = vector.broadcast %cst_49 : f32 to vector<1x1xf32>
    %143 = arith.mulf %141, %142 : vector<1x1xf32>
    %c0_50 = arith.constant 0 : index
    %c0_51 = arith.constant 0 : index
    %144 = vector.load %arg10[%c0_50, %c0_51] : memref<1x1xf32, #tpu.memory_space<vmem>>, vector<1x1xf32>
    tpu.vector_store %arg10[%c0_50, %c0_51], %143 {strides = array<i32>} : memref<1x1xf32, #tpu.memory_space<vmem>>, vector<1x1xf32>,
    return
  }
  func.func @transform_0(%arg0: i32) -> (i32, i32) {
    %c0_i32 = arith.constant 0 : i32
    %c0_i32_0 = arith.constant 0 : i32
    %c0_i32_1 = arith.constant 0 : i32
    return %c0_i32, %c0_i32_0 : i32, i32
  }
  func.func @transform_1(%arg0: i32) -> (i32, i32) {
    %c0_i32 = arith.constant 0 : i32
    %c0_i32_0 = arith.constant 0 : i32
    %c0_i32_1 = arith.constant 0 : i32
    return %c0_i32, %c0_i32_0 : i32, i32
  }
  func.func @transform_2(%arg0: i32) -> (i32, i32) {
    %c0_i32 = arith.constant 0 : i32
    %c0_i32_0 = arith.constant 0 : i32
    %c0_i32_1 = arith.constant 0 : i32
    return %c0_i32, %c0_i32_0 : i32, i32
  }
  func.func @transform_3(%arg0: i32) -> (i32, i32) {
    %c0_i32 = arith.constant 0 : i32
    %c0_i32_0 = arith.constant 0 : i32
    %c0_i32_1 = arith.constant 0 : i32
    return %c0_i32, %c0_i32_0 : i32, i32
  }
  func.func @transform_4(%arg0: i32) -> (i32, i32) {
    %c0_i32 = arith.constant 0 : i32
    %c0_i32_0 = arith.constant 0 : i32
    %c0_i32_1 = arith.constant 0 : i32
    return %c0_i32, %c0_i32_0 : i32, i32
  }
  func.func @transform_5(%arg0: i32) -> (i32, i32) {
    %c0_i32 = arith.constant 0 : i32
    %c0_i32_0 = arith.constant 0 : i32
    %c0_i32_1 = arith.constant 0 : i32
    return %c0_i32, %c0_i32_0 : i32, i32
  }
  func.func @transform_6(%arg0: i32) -> (i32, i32) {
    %c0_i32 = arith.constant 0 : i32
    %c0_i32_0 = arith.constant 0 : i32
    %c0_i32_1 = arith.constant 0 : i32
    return %c0_i32, %c0_i32_0 : i32, i32
  }
  func.func @transform_7(%arg0: i32) -> (i32, i32) {
    %c0_i32 = arith.constant 0 : i32
    %c0_i32_0 = arith.constant 0 : i32
    %c0_i32_1 = arith.constant 0 : i32
    return %c0_i32, %c0_i32_0 : i32, i32
  }
  func.func @transform_8(%arg0: i32) -> (i32, i32) {
    %c0_i32 = arith.constant 0 : i32
    %c0_i32_0 = arith.constant 0 : i32
    %c0_i32_1 = arith.constant 0 : i32
    return %c0_i32, %c0_i32_0 : i32, i32
  }
  func.func @transform_9(%arg0: i32) -> (i32, i32) {
    %c0_i32 = arith.constant 0 : i32
    %c0_i32_0 = arith.constant 0 : i32
    %c0_i32_1 = arith.constant 0 : i32
    return %c0_i32, %c0_i32_0 : i32, i32
  }
}

</mosaic_0001>

<bundles_post_ra>
// kernel: attention_distillation_forward.1
= control target key start
LH: loop header
LB: loop body
LE: loop exit
PB: predicated region body
PF: predicated region fallthrough
CT: control target
= control target key end

     0   :  { %15 = vsyncpa [#allocation3], 0  ;;  %s2442_s0 = inlined_call_operand.vmem [shape: bf16[32,128], index: 0, kind: input, shape index: {}]   ;;  %s2443_s1 = inlined_call_operand.vmem [shape: bf16[128,128], index: 1, kind: input, shape index: {}]   ;;  %s2444_s2 = inlined_call_operand.vmem [shape: bf16[128,128], index: 2, kind: input, shape index: {}]   ;;  %s2445_s3 = inlined_call_operand.vmem [shape: bf16[128,128], index: 3, kind: input, shape index: {}]   ;;  %s2446_s4 = inlined_call_operand.vmem [shape: bf16[128,128], index: 4, kind: input, shape index: {}]   ;;  %s2447_s5 = inlined_call_operand.vmem [shape: f32[32,128], index: 5, kind: input, shape index: {}]   ;;  %s2448_s6 = inlined_call_operand.vmem [shape: f32[32,128], index: 6, kind: input, shape index: {}]   ;;  %s2449_s7 = inlined_call_operand.vmem [shape: f32[1,128], index: 7, kind: input, shape index: {}]   ;;  %s2450_s8 = inlined_call_operand.hbm [shape: f32[32,128], index: 8, kind: output, shape index: {0}]   ;;  %s2451_s9 = inlined_call_operand.hbm [shape: f32[1,1], index: 9, kind: output, shape index: {1}]  }
   0x1   :  { %v1800_v0 = vld [vmem:[%s2443_s1] sm:$0xff]   ;;  %v1802_v2 = vld [vmem:[%s2443_s1 + $0x8] sm:$0xff]   ;;  %v1804_v4 = vld [vmem:[%s2443_s1 + $0x10] sm:$0xff]  }
   0x2   :  { %v1801_v1 = vld [vmem:[%s2444_s2] sm:$0xff]   ;;  %1603 = vmatprep.subr.bf16.mxu0 %v1800_v0  ;;  %v1803_v3 = vld [vmem:[%s2444_s2 + $0x8] sm:$0xff]   ;;  %v1805_v5 = vld [vmem:[%s2444_s2 + $0x10] sm:$0xff]  }
   0x3   :  { %1623 = vmatprep.subr.bf16.mxu1 %v1801_v1  ;;  %1604 = vmatpush3.bf16.msra.mxu0 %v1800_v0  ;;  %v1806_v6 = vld [vmem:[%s2443_s1 + $0x18] sm:$0xff]   ;;  %v1808_v8 = vld [vmem:[%s2443_s1 + $0x20] sm:$0xff]   ;;  %v1810_v10 = vld [vmem:[%s2443_s1 + $0x28] sm:$0xff]  }
   0x4   :  { %1624 = vmatpush3.bf16.msra.mxu1 %v1801_v1  ;;  %1605 = vmatprep.subr.bf16.mxu0 %v1802_v2  ;;  %v1807_v7 = vld [vmem:[%s2444_s2 + $0x18] sm:$0xff]   ;;  %v1809_v9 = vld [vmem:[%s2444_s2 + $0x20] sm:$0xff]   ;;  %v1811_v12 = vld [vmem:[%s2444_s2 + $0x28] sm:$0xff]  }
   0x5   :  { %1625 = vmatprep.subr.bf16.mxu1 %v1803_v3  ;;  %v1816_v11 = vld [vmem:[%s2442_s0] sm:$0xff]   ;;  %v1812_v13 = vld [vmem:[%s2443_s1 + $0x30] sm:$0xff]   ;;  %v1814_v15 = vld [vmem:[%s2443_s1 + $0x38] sm:$0xff]  }
   0x6   :  { %1619 = vmatprep.mubr.bf16.mxu0 %v1816_v11  ;;  %1639 = vmatprep.mubr.bf16.mxu1 %v1816_v11  ;;  %v1813_v14 = vld [vmem:[%s2444_s2 + $0x30] sm:$0xff]   ;;  %v1815_v16 = vld [vmem:[%s2444_s2 + $0x38] sm:$0xff]   ;;  %v1818_v17 = vld [vmem:[%s2445_s3] sm:$0xff]  }
   0x7   :  { %1606 = vmatpush3.bf16.msra.mxu0 %v1802_v2  ;;  %v1817_v18 = vld [vmem:[%s2442_s0 + $0x8] sm:$0xff]  }
   0x8   :  { %1626 = vmatpush3.bf16.msra.mxu1 %v1803_v3  ;;  %1607 = vmatprep.subr.bf16.mxu0 %v1804_v4 }
   0x9   :  { %1627 = vmatprep.subr.bf16.mxu1 %v1805_v5 }
   0xb   :  { %1608 = vmatpush3.bf16.msra.mxu0 %v1804_v4 }
   0xc   :  { %1628 = vmatpush3.bf16.msra.mxu1 %v1805_v5  ;;  %1609 = vmatprep.subr.bf16.mxu0 %v1806_v6 }
   0xd   :  { %1629 = vmatprep.subr.bf16.mxu1 %v1807_v7 }
   0xf   :  { %1610 = vmatpush3.bf16.msra.mxu0 %v1806_v6 }
  0x10   :  { %1630 = vmatpush3.bf16.msra.mxu1 %v1807_v7  ;;  %1611 = vmatprep.subr.bf16.mxu0 %v1808_v8 }
  0x11   :  { %1631 = vmatprep.subr.bf16.mxu1 %v1809_v9 }
  0x13   :  { %1612 = vmatpush3.bf16.msra.mxu0 %v1808_v8 }
  0x14   :  { %1632 = vmatpush3.bf16.msra.mxu1 %v1809_v9  ;;  %1613 = vmatprep.subr.bf16.mxu0 %v1810_v10 }
  0x15   :  { %1633 = vmatprep.subr.bf16.mxu1 %v1811_v12 }
  0x17   :  { %1614 = vmatpush3.bf16.msra.mxu0 %v1810_v10 }
  0x18   :  { %1634 = vmatpush3.bf16.msra.mxu1 %v1811_v12  ;;  %1615 = vmatprep.subr.bf16.mxu0 %v1812_v13 }
  0x19   :  { %1635 = vmatprep.subr.bf16.mxu1 %v1813_v14 }
  0x1b   :  { %1616 = vmatpush3.bf16.msra.mxu0 %v1812_v13 }
  0x1c   :  { %1636 = vmatpush3.bf16.msra.mxu1 %v1813_v14  ;;  %1617 = vmatprep.subr.bf16.mxu0 %v1814_v15 }
  0x1d   :  { %1637 = vmatprep.subr.bf16.mxu1 %v1815_v16 }
  0x1f   :  { %1618 = vmatpush3.bf16.msra.mxu0 %v1814_v15 }
  0x20   :  { %16 = vsyncpa [#allocation5], 0  ;;  %1638 = vmatpush3.bf16.msra.mxu1 %v1815_v16  ;;  %1643 = vmatprep.subr.bf16.mxu0 %v1818_v17  ;;  %v1819_v19 = vld [vmem:[%s2445_s3 + $0x8] sm:$0xff]   ;;  %v1820_v20 = vld [vmem:[%s2445_s3 + $0x10] sm:$0xff]   ;;  %vm473_vm0 = vcmask 523264   ;;  %v398_v15 = vlaneseq  ;;  %vm539_vm11 = vcmask 261120  }
  0x21   :  { %v1821_v21 = vld [vmem:[%s2445_s3 + $0x18] sm:$0xff]   ;;  %v1822_v22 = vld [vmem:[%s2445_s3 + $0x20] sm:$0xff]   ;;  %v1823_v23 = vld [vmem:[%s2445_s3 + $0x28] sm:$0xff]  }
  0x22   :  { %1620 = vmatmul.mubr.bf16.vlgmr.msra.gmra.mrb[0].mxu0 %v1817_v18  ;;  %v1824_v24 = vld [vmem:[%s2445_s3 + $0x30] sm:$0xff]   ;;  %v1825_v25 = vld [vmem:[%s2445_s3 + $0x38] sm:$0xff]   ;;  %v1502_v27 = vld [vmem:[%s2449_s7] ss:$0 sm:$0xff]  ;;  %v2144_v16 = vshrl.u32 %v398_v15, 7 }
  0x23   :  { %1640 = vmatmul.mubr.bf16.vlgmr.msra.gmra.mrb[0].mxu1 %v1817_v18  ;;  %1644 = vmatpush3.bf16.msra.mxu0 %v1818_v17  ;;  %v391_v26 = vld [vmem:[%s2447_s5 + $0x10] sm:$0xff]  ;;  %v389_v30 = vld [vmem:[%s2447_s5] sm:$0xff]  ;;  %v392_v31 = vld [vmem:[%s2447_s5 + $0x18] sm:$0xff]  ;;  %v2146_v17 = vand.u32 127, %v398_v15 }
  0x24   :  { %1645 = vmatprep.subr.bf16.mxu0 %v1819_v19  ;;  %1659 = vmatprep.mubr.bf16.mxu0 %v1816_v11  ;;  %v395_v28 = vld [vmem:[%s2448_s6 + $0x10] sm:$0xff]  ;;  %v396_v37 = vld [vmem:[%s2448_s6 + $0x18] sm:$0xff]  ;;  %v390_v43 = vld [vmem:[%s2447_s5 + $0x8] sm:$0xff] }
  0x25   :  { %v393_v50 = vld [vmem:[%s2448_s6] sm:$0xff]  ;;  %v394_v56 = vld [vmem:[%s2448_s6 + $0x8] sm:$0xff]  ;;  %vm436_vm1 = vcmp.ge.s32.totalorder %v2146_v17, 16  ;;  %vm437_vm2 = vcmp.lt.s32.totalorder %v2146_v17, 32  ;;  %vm418_vm5 = vcmp.lt.s32.totalorder %v2146_v17, 16  ;;  %vm447_vm6 = vcmp.le.s32.totalorder %v2146_v17, %v2144_v16  ;;  %s1922_s6 = smov 64  }
  0x26   :  { %vm2159_vm3 = vmand %vm436_vm1, %vm437_vm2  ;;  %vm455_vm15 = vcmp.lt.s32.totalorder %v2146_v17, %v2144_v16 }
  0x27   :  { %1646 = vmatpush3.bf16.msra.mxu0 %v1819_v19  ;;  %v2154_v19 = vadd.s32 24, %v2144_v16  ;;  %vm2180_vm10 = vmand %vm418_vm5, %vm447_vm6 }
  0x28   :  { %1647 = vmatprep.subr.bf16.mxu0 %v1820_v20  ;;  %vm2257_vm6 = vmand %vm418_vm5, %vm455_vm15 }
  0x29   :  { %vm450_vm7 = vcmp.le.s32.totalorder %v2146_v17, %v2154_v19  ;;  %vm458_vm1 = vcmp.lt.s32.totalorder %v2146_v17, %v2154_v19 }
  0x2a   :  { %vm2186_vm12 = vmand %vm2159_vm3, %vm450_vm7 }
  0x2b   :  { %1648 = vmatpush3.bf16.msra.mxu0 %v1820_v20  ;;  %v2157_v20 = vadd.s32 8, %v2144_v16  ;;  %vm2263_vm7 = vmand %vm2159_vm3, %vm458_vm1 }
  0x2c   :  { %1649 = vmatprep.subr.bf16.mxu0 %v1821_v21 }
  0x2d   :  { %vm448_vm9 = vcmp.le.s32.totalorder %v2146_v17, %v2157_v20 }
  0x2e   :  { %vm2194_vm13 = vmand %vm418_vm5, %vm448_vm9 }
  0x2f   :  { %1650 = vmatpush3.bf16.msra.mxu0 %v1821_v21 }
  0x30   :  { %1651 = vmatprep.subr.bf16.mxu0 %v1822_v22 }
  0x33   :  { %1652 = vmatpush3.bf16.msra.mxu0 %v1822_v22 }
  0x34   :  { %1653 = vmatprep.subr.bf16.mxu0 %v1823_v23 }
  0x37   :  { %1654 = vmatpush3.bf16.msra.mxu0 %v1823_v23 }
  0x38   :  { %1655 = vmatprep.subr.bf16.mxu0 %v1824_v24 }
  0x3b   :  { %1656 = vmatpush3.bf16.msra.mxu0 %v1824_v24 }
  0x3c   :  { %1657 = vmatprep.subr.bf16.mxu0 %v1825_v25 }
  0x3f   :  { %1658 = vmatpush3.bf16.msra.mxu0 %v1825_v25 }
  0x42   :  { %1660 = vmatmul.mubr.bf16.vlgmr.msra.gmra.mrb[4].mxu0 %v1817_v18  ;;  %v2149_v18 = vadd.s32 16, %v2144_v16 }
  0x44   :  { %vm449_vm4 = vcmp.le.s32.totalorder %v2146_v17, %v2149_v18  ;;  %vm457_vm14 = vcmp.lt.s32.totalorder %v2146_v17, %v2149_v18 }
  0x45   :  { %vm2172_vm8 = vmand %vm2159_vm3, %vm449_vm4  ;;  %vm456_vm4 = vcmp.lt.s32.totalorder %v2146_v17, %v2157_v20 }
  0x46   :  { %vm2249_vm2 = vmand %vm2159_vm3, %vm457_vm14 }
  0x47   :  { %vm2269_vm9 = vmand %vm418_vm5, %vm456_vm4 }
  0xf5   :  { %v1621_v29 = vpop.f32.mrb[0].mxu0 }
  0xf6   :  { %v467_v32 = vmul.f32 0.125, %v1621_v29  ;;  %v643_v33 = vmul.f32 %v1621_v29, %v391_v26  ;;  %v726_v34 = vmul.f32 %v1621_v29, %v1502_v27  ;;  %v1641_v35 = vpop.f32.mrb[0].mxu1  ;;  %v148_v36 = vpop.f32.mrb[1].mxu0 }
  0xf7   :  { %v649_v38 = vmul.f32 %v1641_v35, %v395_v28  ;;  %v465_v39 = vmul.f32 0.125, %v148_v36  ;;  %v724_v40 = vmul.f32 %v1502_v27, %v148_v36  ;;  %v261_v41 = vpop.f32.mrb[1].mxu1  ;;  %v1622_v42 = vpop.f32.mrb[2].mxu0  ;;  %v641_v45 = vmul.f32 %v389_v30, %v148_v36 }
  0xf8   :  { %v2076_v44 = vmul.f32 %v1641_v35, %v726_v34  ;;  %v468_v46 = vmul.f32 0.125, %v1622_v42  ;;  %v644_v47 = vmul.f32 %v1622_v42, %v392_v31  ;;  %v1642_v48 = vpop.f32.mrb[2].mxu1  ;;  %v151_v49 = vpop.f32.mrb[3].mxu0  ;;  %v727_v52 = vmul.f32 %v1622_v42, %v1502_v27 }
  0xf9   :  { %v2081_v51 = vmul.f32 %v724_v40, %v261_v41  ;;  %v2083_v53 = vpack.c.bf16 %v1642_v48, %v1641_v35  ;;  %v650_v54 = vmul.f32 %v1642_v48, %v396_v37  ;;  %v264_v55 = vpop.f32.mrb[3].mxu1  ;;  %v466_v59 = vmul.f32 0.125, %v151_v49 }
  0xfa   :  { %v2088_v57 = vpack.c.bf16 %v468_v46, %v467_v32  ;;  %v2090_v58 = vpack.c.bf16 %v644_v47, %v643_v33  ;;  %v642_v60 = vmul.f32 %v390_v43, %v151_v49  ;;  %v2094_v62 = vmul.f32 %v1642_v48, %v727_v52 }
  0xfb   :  { %v2092_v61 = vpack.c.bf16 %v650_v54, %v649_v38  ;;  %v725_v63 = vmul.f32 %v1502_v27, %v151_v49  ;;  %v2096_v0 = vpack.c.bf16 %v264_v55, %v261_v41  ;;  %v647_v1 = vmul.f32 %v393_v50, %v261_v41 }
  0xfc   :  { %v2098_v2 = vpack.c.bf16 %v466_v59, %v465_v39  ;;  %v2100_v3 = vpack.c.bf16 %v642_v60, %v641_v45  ;;  %v648_v4 = vmul.f32 %v394_v56, %v264_v55  ;;  %v484_v8 = vsel %vm473_vm0, %v2083_v53, 0 }
  0xfd   :  { %v2102_v5 = vmul.f32 %v725_v63, %v264_v55  ;;  %1767 = vmatprep.subr.msk.bf16.mxu1 %vm473_vm0, %v2096_v0  ;;  %v481_v6 = vsel %vm473_vm0, %v2096_v0, 0 }
  0xfe   :  { %v2108_v7 = vpack.c.bf16 %v648_v4, %v647_v1  ;;  %1664 = vmatpush3.bf16.xpose.msra.mxu1 %v481_v6  ;;  %1667 = vmatprep.mubr.msk.bf16.mxu1 %vm473_vm0, %v2098_v2 }
  0xff   :  { %1768 = vmatprep.subr.msk.bf16.mxu1 %vm473_vm0, %v2083_v53 }
 0x106   :  { %1666 = vmatpush3.bf16.xpose.msra.mxu1 %v484_v8 }
 0x10d   :  { %1668 = vmatmul.mubr.msk.bf16.vlgmr.msra.gmra.mrb[4].mxu1 %vm473_vm0, %v2088_v57 }
 0x115   :  { %v2118_v9 = vpop.f32.mrb[4].mxu0 }
 0x116   :  { %v2120_v10 = vpop.f32.mrb[5].mxu0 }
 0x117   :  { %v2122_v11 = vpop.f32.mrb[6].mxu0 }
 0x118   :  { %v2126_v12 = vpack.c.bf16 %v2122_v11, %v2118_v9  ;;  %v2128_v13 = vpop.f32.mrb[7].mxu0 }
 0x119   :  { %v2132_v14 = vpack.c.bf16 %v2128_v13, %v2120_v10 }
 0x11b   :  { %1671 = vmatprep.subr.bf16.mxu1 %v2132_v14  ;;  %1687 = vmatprep.subr.bf16.mxu0 %v2132_v14 }
 0x11c   :  { %1672 = vmatpush3.bf16.msra.mxu1 %v2132_v14  ;;  %1688 = vmatpush3.bf16.msra.mxu0 %v2132_v14 }
 0x11d   :  { %1673 = vmatprep.subr.bf16.mxu1 %v2126_v12  ;;  %1689 = vmatprep.subr.bf16.mxu0 %v2126_v12 }
 0x120   :  { %1674 = vmatpush3.bf16.msra.mxu1 %v2126_v12  ;;  %1690 = vmatpush3.bf16.msra.mxu0 %v2126_v12 }
 0x121   :  { %1769 = vmatprep.subr.msk.bf16.mxu1 %vm473_vm0, %v2108_v7 }
 0x1e0   :  { %v1669_v24 = vpop.f32.mrb[4].mxu1 }
 0x1e1   :  { %v537_v26 = vsel %vm2172_vm8, %v1669_v24, -1e+30  ;;  %v520_v27 = vpop.f32.mrb[5].mxu1 }
 0x1e2   :  { %v535_v29 = vsel %vm2180_vm10, %v520_v27, -1e+30  ;;  %v1670_v30 = vpop.f32.mrb[6].mxu1  ;;  %v546_v31 = vsel %vm539_vm11, %v537_v26, -inf }
 0x1e3   :  { %v538_v32 = vsel %vm2186_vm12, %v1670_v30, -1e+30  ;;  %547 = vmax.xlane.f32.xlu1 %v546_v31  ;;  %v523_v33 = vpop.f32.mrb[7].mxu1  ;;  %v540_v34 = vsel %vm539_vm11, %v535_v29, -inf }
 0x1e4   :  { %v536_v35 = vsel %vm2194_vm13, %v523_v33, -1e+30  ;;  %541 = vmax.xlane.f32.xlu0 %v540_v34  ;;  %v549_v36 = vsel %vm539_vm11, %v538_v32, -inf  ;;  %v660_v33 = vsel %vm473_vm0, %v2108_v7, 0  ;;  %v663_v34 = vsel %vm473_vm0, %v2092_v61, 0 }
 0x1e5   :  { %v543_v37 = vsel %vm539_vm11, %v536_v35, -inf }
 0x1e7   :  { %550 = vmax.xlane.f32.xlu1 %v549_v36 }
 0x1e8   :  { %544 = vmax.xlane.f32.xlu0 %v543_v37 }
 0x270   :  { %v548_v38 = vpop.xlane.xlu1 %547 }
 0x271   :  { %v554_v39 = vsub.f32 %v537_v26, %v548_v38  ;;  %v542_v40 = vpop.xlane.xlu0 %541 }
 0x272   :  { %v552_v41 = vsub.f32 %v535_v29, %v542_v40 }
 0x273   :  { %v560_v42 = vmul.f32 1.442695, %v554_v39 }
 0x274   :  { %v556_v43 = vmul.f32 1.442695, %v552_v41  ;;  %v551_v45 = vpop.xlane.xlu1 %550 }
 0x275   :  { %v555_v46 = vsub.f32 %v538_v32, %v551_v45  ;;  %v545_v47 = vpop.xlane.xlu0 %544 }
 0x276   :  { %1834 = vpow2.f32 %v556_v43  ;;  %v553_v48 = vsub.f32 %v536_v35, %v545_v47 }
 0x277   :  { %1836 = vpow2.f32 %v560_v42  ;;  %v562_v49 = vmul.f32 1.442695, %v555_v46 }
 0x278   :  { %v558_v50 = vmul.f32 1.442695, %v553_v48 }
 0x27a   :  { %1838 = vpow2.f32 %v558_v50 }
 0x27b   :  { %1840 = vpow2.f32 %v562_v49 }
 0x280   :  { %v1835_v52 = vpop.eup %1834 }
 0x281   :  { %v564_v54 = vsel %vm539_vm11, %v1835_v52, 0.0  ;;  %v1837_v55 = vpop.eup %1836 }
 0x282   :  { %565 = vadd.xlane.f32.xlu0 %v564_v54  ;;  %v570_v59 = vsel %vm539_vm11, %v1837_v55, 0.0 }
 0x284   :  { %v1839_v56 = vpop.eup %1838 }
 0x285   :  { %v567_v60 = vsel %vm539_vm11, %v1839_v56, 0.0  ;;  %v1841_v63 = vpop.eup %1840 }
 0x286   :  { %571 = vadd.xlane.f32.xlu0 %v570_v59  ;;  %568 = vadd.xlane.f32.xlu1 %v567_v60  ;;  %v573_v1 = vsel %vm539_vm11, %v1841_v63, 0.0 }
 0x28a   :  { %574 = vadd.xlane.f32.xlu1 %v573_v1 }
 0x29b   :  { %815 = vrot.lane.b32.xlu1 %v2083_v53, %s1922_s6 }
 0x29c   :  { %813 = vrot.lane.b32.xlu0 %v2096_v0, %s1922_s6 }
 0x29f   :  { %807 = vrot.lane.b32.xlu1 %v2098_v2, %s1922_s6 }
 0x2a3   :  { %809 = vrot.lane.b32.xlu1 %v2088_v57, %s1922_s6 }
 0x30f   :  { %v566_v4 = vpop.xlane.xlu0 %565 }
 0x310   :  { %1842 = vrcp.f32 %v566_v4 }
 0x313   :  { %v569_v6 = vpop.xlane.xlu1 %568  ;;  %v572_v8 = vpop.xlane.xlu0 %571 }
 0x314   :  { %1844 = vrcp.f32 %v569_v6 }
 0x315   :  { %1846 = vrcp.f32 %v572_v8 }
 0x317   :  { %v575_v15 = vpop.xlane.xlu1 %574  ;;  %v814_v24 = vpop.permute.xlu0 %813 }
 0x318   :  { %1848 = vrcp.f32 %v575_v15  ;;  %1771 = vmatprep.subr.msk.bf16.mxu0 %vm473_vm0, %v814_v24  ;;  %v824_v49 = vsel %vm473_vm0, %v814_v24, 0 }
 0x31a   :  { %v1843_v53 = vpop.eup %1842 }
 0x31b   :  { %v580_v0 = vmul.f32 %v1843_v53, %v1835_v52  ;;  %v816_v20 = vpop.permute.xlu1 %815 }
 0x31c   :  { %v827_v52 = vsel %vm473_vm0, %v816_v20, 0 }
 0x31e   :  { %v1845_v26 = vpop.eup %1844 }
 0x31f   :  { %v581_v27 = vmul.f32 %v1845_v26, %v1839_v56  ;;  %v1847_v29 = vpop.eup %1846  ;;  %v808_v50 = vpop.permute.xlu1 %807 }
 0x320   :  { %v582_v31 = vmul.f32 %v1847_v29, %v1837_v55 }
 0x321   :  { %v584_v2 = vpack.c.bf16 %v581_v27, %v580_v0 }
 0x322   :  { %v1849_v30 = vpop.eup %1848 }
 0x323   :  { %v583_v57 = vmul.f32 %v1849_v30, %v1841_v63  ;;  %1675 = vmatprep.mubr.msk.bf16.mxu1 %vm539_vm11, %v584_v2  ;;  %v810_v54 = vpop.permute.xlu1 %809 }
 0x325   :  { %v585_v32 = vpack.c.bf16 %v583_v57, %v582_v31 }
 0x327   :  { %1676 = vmatmul.mubr.msk.bf16.vlgmr.msra.gmra.mrb[8].mxu1 %vm539_vm11, %v585_v32 }
 0x328   :  { %1680 = vmatpush3.bf16.xpose.msra.mxu1 %v660_v33  ;;  %1683 = vmatprep.mubr.msk.bf16.mxu1 %vm473_vm0, %v2100_v3 }
 0x329   :  { %1770 = vmatprep.subr.msk.bf16.mxu1 %vm473_vm0, %v2092_v61 }
 0x330   :  { %1682 = vmatpush3.bf16.xpose.msra.mxu1 %v663_v34 }
 0x337   :  { %1684 = vmatmul.mubr.msk.bf16.vlgmr.msra.gmra.mrb[12].mxu1 %vm473_vm0, %v2090_v58 }
 0x3fa   :  { %v2233_v35 = vpop.f32.mrb[8].mxu1 }
 0x3fb   :  { %v2235_v36 = vpop.f32.mrb[9].mxu1 }
 0x3fc   :  { %v2237_v37 = vpop.f32.mrb[10].mxu1 }
 0x3fd   :  { %v2239_v38 = vpop.f32.mrb[11].mxu1 }
 0x40a   :  { %v1685_v18 = vpop.f32.mrb[12].mxu1 }
 0x40b   :  { %v699_v19 = vpop.f32.mrb[13].mxu1  ;;  %v716_v43 = vsel %vm2249_vm2, %v1685_v18, 0.0 }
 0x40c   :  { %v1686_v42 = vpop.f32.mrb[14].mxu1  ;;  %v714_v46 = vsel %vm2257_vm6, %v699_v19, 0.0 }
 0x40d   :  { %v717_v45 = vsel %vm2263_vm7, %v1686_v42, 0.0  ;;  %v702_v21 = vpop.f32.mrb[15].mxu1 }
 0x40e   :  { %v745_v47 = vpack.c.bf16 %v717_v45, %v716_v43  ;;  %v715_v17 = vsel %vm2269_vm9, %v702_v21, 0.0 }
 0x40f   :  { %v744_v48 = vpack.c.bf16 %v715_v17, %v714_v46 }
 0x411   :  { %1691 = vmatprep.mubr.msk.bf16.mxu0 %vm539_vm11, %v744_v48 }
 0x412   :  { %1692 = vmatmul.mubr.msk.bf16.vlgmr.msra.gmra.mrb[8].mxu0 %vm539_vm11, %v745_v47 }
 0x413   :  { %1696 = vmatpush3.bf16.xpose.msra.mxu0 %v824_v49  ;;  %1699 = vmatprep.mubr.msk.bf16.mxu0 %vm473_vm0, %v808_v50 }
 0x414   :  { %1772 = vmatprep.subr.msk.bf16.mxu0 %vm473_vm0, %v816_v20 }
 0x41b   :  { %1698 = vmatpush3.bf16.xpose.msra.mxu0 %v827_v52 }
 0x422   :  { %1700 = vmatmul.mubr.msk.bf16.vlgmr.msra.gmra.mrb[12].mxu0 %vm473_vm0, %v810_v54 }
 0x4e5   :  { %v2288_v55 = vpop.f32.mrb[8].mxu0 }
 0x4e6   :  { %v2290_v56 = vpop.f32.mrb[9].mxu0 }
 0x4e7   :  { %v2292_v59 = vpop.f32.mrb[10].mxu0 }
 0x4e8   :  { %v2294_v60 = vpop.f32.mrb[11].mxu0 }
 0x4f5   :  { %v1701_v63 = vpop.f32.mrb[12].mxu0 }
 0x4f6   :  { %v863_v1 = vpop.f32.mrb[13].mxu0  ;;  %v880_v24 = vsel %vm2172_vm8, %v1701_v63, -1e+30 }
 0x4f7   :  { %v878_v4 = vsel %vm2180_vm10, %v863_v1, -1e+30  ;;  %v1702_v6 = vpop.f32.mrb[14].mxu0  ;;  %v888_v0 = vsel %vm539_vm11, %v880_v24, -inf }
 0x4f8   :  { %v866_v8 = vpop.f32.mrb[15].mxu0  ;;  %v882_v15 = vsel %vm539_vm11, %v878_v4, -inf  ;;  %v881_v23 = vsel %vm2186_vm12, %v1702_v6, -1e+30 }
 0x4f9   :  { %v879_v53 = vsel %vm2194_vm13, %v866_v8, -1e+30  ;;  %883 = vmax.xlane.f32.xlu0 %v882_v15  ;;  %v891_v27 = vsel %vm539_vm11, %v881_v23, -inf }
 0x4fa   :  { %v885_v26 = vsel %vm539_vm11, %v879_v53, -inf }
 0x4fb   :  { %886 = vmax.xlane.f32.xlu1 %v885_v26 }
 0x4fd   :  { %889 = vmax.xlane.f32.xlu0 %v888_v0 }
 0x501   :  { %892 = vmax.xlane.f32.xlu0 %v891_v27 }
 0x50c   :  { %932 = vrot.lane.b32.xlu1 %v2126_v12, %s1922_s6 }
 0x586   :  { %v884_v22 = vpop.xlane.xlu0 %883 }
 0x587   :  { %v894_v29 = vsub.f32 %v878_v4, %v884_v22 }
 0x588   :  { %v887_v28 = vpop.xlane.xlu1 %886 }
 0x589   :  { %v898_v31 = vmul.f32 1.442695, %v894_v29  ;;  %v895_v57 = vsub.f32 %v879_v53, %v887_v28 }
 0x58a   :  { %v890_v2 = vpop.xlane.xlu0 %889 }
 0x58b   :  { %v896_v30 = vsub.f32 %v880_v24, %v890_v2  ;;  %v900_v25 = vmul.f32 1.442695, %v895_v57 }
 0x58d   :  { %v902_v32 = vmul.f32 1.442695, %v896_v30 }
 0x58e   :  { %v893_v33 = vpop.xlane.xlu0 %892 }
 0x58f   :  { %1850 = vpow2.f32 %v902_v32  ;;  %v897_v34 = vsub.f32 %v881_v23, %v893_v33  ;;  %v1826_v33 = vld [vmem:[%s2446_s4] sm:$0xff]  }
 0x590   :  { %1852 = vpow2.f32 %v898_v31 }
 0x591   :  { %v904_v18 = vmul.f32 1.442695, %v897_v34 }
 0x593   :  { %1854 = vpow2.f32 %v904_v18 }
 0x594   :  { %1856 = vpow2.f32 %v900_v25 }
 0x599   :  { %v1851_v19 = vpop.eup %1850 }
 0x59a   :  { %v912_v20 = vsel %vm539_vm11, %v1851_v19, 0.0  ;;  %v1853_v12 = vpop.eup %1852 }
 0x59b   :  { %913 = vadd.xlane.f32.xlu0 %v912_v20  ;;  %v906_v43 = vsel %vm539_vm11, %v1853_v12, 0.0 }
 0x59d   :  { %v1855_v42 = vpop.eup %1854 }
 0x59e   :  { %v915_v45 = vsel %vm539_vm11, %v1855_v42, 0.0  ;;  %v1857_v21 = vpop.eup %1856 }
 0x59f   :  { %907 = vadd.xlane.f32.xlu0 %v906_v43  ;;  %916 = vadd.xlane.f32.xlu1 %v915_v45  ;;  %v909_v46 = vsel %vm539_vm11, %v1857_v21, 0.0  ;;  %v738_v43 = vsel %vm473_vm0, %v2076_v44, 0.0  ;;  %v741_v45 = vsel %vm473_vm0, %v2094_v62, 0.0 }
 0x5a3   :  { %910 = vadd.xlane.f32.xlu1 %v909_v46  ;;  %v1828_v46 = vld [vmem:[%s2446_s4 + $0x10] sm:$0xff]  }
 0x5b4   :  { %999 = vrot.lane.b32.xlu1 %v2108_v7, %s1922_s6  ;;  %v933_v7 = vpop.permute.xlu1 %932 }
 0x5b5   :  { %930 = vrot.lane.b32.xlu0 %v2132_v14, %s1922_s6 }
 0x5b8   :  { %1001 = vrot.lane.b32.xlu1 %v2092_v61, %s1922_s6 }
 0x5b9   :  { %993 = vrot.lane.b32.xlu0 %v2100_v3, %s1922_s6 }
 0x5bc   :  { %995 = vrot.lane.b32.xlu1 %v2090_v58, %s1922_s6 }
 0x5bd   :  { %1072 = vrot.lane.b32.xlu0 %v2081_v51, %s1922_s6 }
 0x5c0   :  { %1074 = vrot.lane.b32.xlu1 %v2102_v5, %s1922_s6 }
 0x5c1   :  { %1076 = vrot.lane.b32.xlu0 %v2076_v44, %s1922_s6  ;;  %v1829_v44 = vld [vmem:[%s2446_s4 + $0x18] sm:$0xff]  }
 0x5c4   :  { %1078 = vrot.lane.b32.xlu1 %v2094_v62, %s1922_s6  ;;  %v1830_v62 = vld [vmem:[%s2446_s4 + $0x20] sm:$0xff]  }
 0x628   :  { %v914_v61 = vpop.xlane.xlu0 %913 }
 0x62c   :  { %v908_v14 = vpop.xlane.xlu0 %907  ;;  %v917_v47 = vpop.xlane.xlu1 %916 }
 0x62d   :  { %1858 = vrcp.f32 %v917_v47 }
 0x62e   :  { %1860 = vrcp.f32 %v908_v14 }
 0x62f   :  { %1862 = vrcp.f32 %v914_v61  ;;  %v1833_v61 = vld [vmem:[%s2446_s4 + $0x38] sm:$0xff]  }
 0x630   :  { %v931_v58 = vpop.permute.xlu0 %930  ;;  %v911_v3 = vpop.xlane.xlu1 %910 }
 0x631   :  { %1864 = vrcp.f32 %v911_v3  ;;  %1703 = vmatprep.subr.bf16.mxu1 %v931_v58  ;;  %1719 = vmatprep.subr.bf16.mxu0 %v931_v58 }
 0x632   :  { %1704 = vmatpush3.bf16.msra.mxu1 %v931_v58  ;;  %1720 = vmatpush3.bf16.msra.mxu0 %v931_v58 }
 0x633   :  { %1705 = vmatprep.subr.bf16.mxu1 %v933_v7  ;;  %1721 = vmatprep.subr.bf16.mxu0 %v933_v7 }
 0x634   :  { %v994_v17 = vpop.permute.xlu0 %993  ;;  %v1000_v48 = vpop.permute.xlu1 %999 }
 0x635   :  { %v1010_v29 = vsel %vm473_vm0, %v1000_v48, 0 }
 0x636   :  { %1706 = vmatpush3.bf16.msra.mxu1 %v933_v7  ;;  %1722 = vmatpush3.bf16.msra.mxu0 %v933_v7  ;;  %v1831_v7 = vld [vmem:[%s2446_s4 + $0x28] sm:$0xff]  }
 0x637   :  { %1773 = vmatprep.subr.msk.bf16.mxu1 %vm473_vm0, %v1000_v48  ;;  %v1859_v49 = vpop.eup %1858  ;;  %1727 = vmatprep.subr.bf16.mxu0 %v1826_v33 }
 0x638   :  { %v1073_v50 = vpop.permute.xlu0 %1072  ;;  %v1002_v52 = vpop.permute.xlu1 %1001  ;;  %v925_v6 = vmul.f32 %v1859_v49, %v1855_v42  ;;  %v732_v42 = vsel %vm473_vm0, %v2081_v51, 0.0  ;;  %v735_v51 = vsel %vm473_vm0, %v2102_v5, 0.0  ;;  %v1832_v5 = vld [vmem:[%s2446_s4 + $0x30] sm:$0xff]  }
 0x639   :  { %v1861_v54 = vpop.eup %1860  ;;  %v1084_v63 = vsel %vm473_vm0, %v1073_v50, 0.0  ;;  %v1013_v31 = vsel %vm473_vm0, %v1002_v52, 0 }
 0x63a   :  { %v1863_v1 = vpop.eup %1862  ;;  %1085 = vadd.xlane.f32.xlu0 %v1084_v63  ;;  %v922_v24 = vmul.f32 %v1861_v54, %v1853_v12 }
 0x63b   :  { %v1865_v4 = vpop.eup %1864  ;;  %v924_v26 = vmul.f32 %v1863_v1, %v1851_v19 }
 0x63c   :  { %v1077_v8 = vpop.permute.xlu0 %1076  ;;  %v996_v15 = vpop.permute.xlu1 %995  ;;  %v923_v53 = vmul.f32 %v1865_v4, %v1857_v21  ;;  %v1827_v21 = vld [vmem:[%s2446_s4 + $0x8] sm:$0xff]   ;;  %s1923_s4 = smov [#allocation2]  }
 0x63d   :  { %v1090_v0 = vsel %vm473_vm0, %v1077_v8, 0.0  ;;  %v927_v27 = vpack.c.bf16 %v925_v6, %v924_v26  ;;  %s1445_s23 = sshll.u32 %s1923_s4, 4  ;;  %s1446_s23 = int_to_ptr.vmem [resolvable:$true] %s1445_s23 }
 0x63e   :  { %1091 = vadd.xlane.f32.xlu0 %v1090_v0  ;;  %v926_v23 = vpack.c.bf16 %v923_v53, %v922_v24  ;;  %s1874_s3 = scalar_lea.vmem %s1446_s23, 512  ;;  %p1879_p1 = scmp.lt.s32.totalorder %s1446_s23, %s1446_s23 }
 0x63f   :  { %p1875_p0 = scmp.ne.s32.totalorder %s1446_s23, %s1874_s3  ;;  %p1880_p2 = scmp.lt.s32.totalorder %s1874_s3, %s1874_s3 }
 0x640   :  { %1707 = vmatprep.mubr.msk.bf16.mxu1 %vm539_vm11, %v926_v23  ;;  %v1075_v22 = vpop.permute.xlu1 %1074 }
 0x641   :  { %1708 = vmatmul.mubr.msk.bf16.vlgmr.msra.gmra.mrb[16].mxu1 %vm539_vm11, %v927_v27  ;;  %v1087_v28 = vsel %vm473_vm0, %v1075_v22, 0.0  ;;  %p1881_p3 = por %p1880_p2, %p1879_p1 }
 0x642   :  { %1712 = vmatpush3.bf16.xpose.msra.mxu1 %v1010_v29  ;;  %1715 = vmatprep.mubr.msk.bf16.mxu1 %vm473_vm0, %v994_v17 }
 0x643   :  { %1774 = vmatprep.subr.msk.bf16.mxu1 %vm473_vm0, %v1002_v52  ;;  %1088 = vadd.xlane.f32.xlu1 %v1087_v28  ;;  %p1882_p4 = pnand %p1881_p3, %p1875_p0 }
 0x644   :  { %v1079_v2 = vpop.permute.xlu1 %1078 }
 0x645   :  { %v1093_v30 = vsel %vm473_vm0, %v1079_v2, 0.0 }
 0x646   :  { %1094 = vadd.xlane.f32.xlu0 %v1093_v30 }
 0x64a   :  { %1714 = vmatpush3.bf16.xpose.msra.mxu1 %v1013_v31 }
 0x64b   :  { %1747 = vmatprep.subr.bf16.mxu1 %v1826_v33 }
 0x651   :  { %1716 = vmatmul.mubr.msk.bf16.vlgmr.msra.gmra.mrb[20].mxu1 %vm473_vm0, %v996_v15 }
 0x652   :  { %1748 = vmatpush3.bf16.msra.mxu1 %v1826_v33 }
 0x653   :  { %1749 = vmatprep.subr.bf16.mxu1 %v1827_v21 }
 0x656   :  { %1750 = vmatpush3.bf16.msra.mxu1 %v1827_v21 }
 0x657   :  { %1751 = vmatprep.subr.bf16.mxu1 %v1828_v46 }
 0x65a   :  { %1752 = vmatpush3.bf16.msra.mxu1 %v1828_v46 }
 0x65b   :  { %1753 = vmatprep.subr.bf16.mxu1 %v1829_v44 }
 0x65e   :  { %1754 = vmatpush3.bf16.msra.mxu1 %v1829_v44 }
 0x65f   :  { %1755 = vmatprep.subr.bf16.mxu1 %v1830_v62 }
 0x662   :  { %1756 = vmatpush3.bf16.msra.mxu1 %v1830_v62 }
 0x663   :  { %1757 = vmatprep.subr.bf16.mxu1 %v1831_v7 }
 0x666   :  { %1758 = vmatpush3.bf16.msra.mxu1 %v1831_v7 }
 0x667   :  { %1759 = vmatprep.subr.bf16.mxu1 %v1832_v5 }
 0x66a   :  { %1760 = vmatpush3.bf16.msra.mxu1 %v1832_v5 }
 0x66b   :  { %1761 = vmatprep.subr.bf16.mxu1 %v1833_v61 }
 0x66e   :  { %1762 = vmatpush3.bf16.msra.mxu1 %v1833_v61 }
 0x6c7   :  { %v1086_v57 = vpop.xlane.xlu0 %1085 }
 0x6c8   :  { %v1098_v32 = vmul.f32 %v1086_v57, %v2120_v10 }
 0x6ca   :  { %1106 = vrot.lane.b32.xlu0 %v1098_v32, %s1922_s6 }
 0x6cb   :  { %v1092_v18 = vpop.xlane.xlu0 %1091 }
 0x6cc   :  { %v1100_v19 = vmul.f32 %v2118_v9, %v1092_v18 }
 0x6d0   :  { %v1089_v34 = vpop.xlane.xlu1 %1088 }
 0x6d1   :  { %v1099_v25 = vmul.f32 %v1089_v34, %v2128_v13 }
 0x6d3   :  { %1108 = vrot.lane.b32.xlu1 %v1099_v25, %s1922_s6  ;;  %v1095_v20 = vpop.xlane.xlu0 %1094 }
 0x6d4   :  { %v1101_v12 = vmul.f32 %v2122_v11, %v1095_v20 }
 0x6d7   :  { %1110 = vrot.lane.b32.xlu1 %v1100_v19, %s1922_s6 }
 0x6db   :  { %1112 = vrot.lane.b32.xlu1 %v1101_v12, %s1922_s6 }
 0x6e9   :  { %733 = vadd.xlane.f32.xlu0 %v732_v42 }
 0x6ed   :  { %739 = vadd.xlane.f32.xlu0 %v738_v43 }
 0x6f1   :  { %742 = vadd.xlane.f32.xlu0 %v741_v45 }
 0x6ff   :  { %736 = vadd.xlane.f32.xlu1 %v735_v51 }
 0x714   :  { %v1709_v14 = vpop.f32.mrb[16].mxu1 }
 0x715   :  { %v976_v47 = vpop.f32.mrb[17].mxu1 }
 0x716   :  { %v1710_v58 = vpop.f32.mrb[18].mxu1 }
 0x717   :  { %v1785_v3 = vpack.i.bf16 %v1710_v58, %v1709_v14  ;;  %v979_v17 = vpop.f32.mrb[19].mxu1 }
 0x718   :  { %v1780_v48 = vpack.i.bf16 %v979_v17, %v976_v47 }
 0x719   :  { %1786 = vrot.lane.b32.xlu1 %v1785_v3, %s1922_s6 }
 0x71a   :  { %1781 = vrot.lane.b32.xlu0 %v1780_v48, %s1922_s6 }
 0x724   :  { %v1717_v49 = vpop.f32.mrb[20].mxu1 }
 0x725   :  { %v1049_v50 = vpop.f32.mrb[21].mxu1  ;;  %v1066_v54 = vsel %vm2249_vm2, %v1717_v49, 0.0 }
 0x726   :  { %v1718_v52 = vpop.f32.mrb[22].mxu1  ;;  %v1064_v4 = vsel %vm2257_vm6, %v1049_v50, 0.0 }
 0x727   :  { %v1067_v63 = vsel %vm2263_vm7, %v1718_v52, 0.0  ;;  %v1052_v1 = vpop.f32.mrb[23].mxu1 }
 0x728   :  { %v1097_v6 = vpack.c.bf16 %v1067_v63, %v1066_v54  ;;  %v1065_v8 = vsel %vm2269_vm9, %v1052_v1, 0.0 }
 0x729   :  { %v1096_v15 = vpack.c.bf16 %v1065_v8, %v1064_v4 }
 0x72b   :  { %1723 = vmatprep.mubr.msk.bf16.mxu0 %vm539_vm11, %v1096_v15 }
 0x72c   :  { %1724 = vmatmul.mubr.msk.bf16.vlgmr.msra.gmra.mrb[16].mxu0 %vm539_vm11, %v1097_v6 }
 0x72d   :  { %1728 = vmatpush3.bf16.msra.mxu0 %v1826_v33 }
 0x72e   :  { %1729 = vmatprep.subr.bf16.mxu0 %v1827_v21 }
 0x731   :  { %1730 = vmatpush3.bf16.msra.mxu0 %v1827_v21 }
 0x732   :  { %1731 = vmatprep.subr.bf16.mxu0 %v1828_v46 }
 0x735   :  { %1732 = vmatpush3.bf16.msra.mxu0 %v1828_v46 }
 0x736   :  { %1733 = vmatprep.subr.bf16.mxu0 %v1829_v44 }
 0x739   :  { %1734 = vmatpush3.bf16.msra.mxu0 %v1829_v44 }
 0x73a   :  { %1735 = vmatprep.subr.bf16.mxu0 %v1830_v62 }
 0x73c   :  { %v1107_v39 = vpop.permute.xlu0 %1106 }
 0x73d   :  { %1736 = vmatpush3.bf16.msra.mxu0 %v1830_v62 }
 0x73e   :  { %1737 = vmatprep.subr.bf16.mxu0 %v1831_v7 }
 0x741   :  { %1738 = vmatpush3.bf16.msra.mxu0 %v1831_v7 }
 0x742   :  { %1739 = vmatprep.subr.bf16.mxu0 %v1832_v5 }
 0x745   :  { %1740 = vmatpush3.bf16.msra.mxu0 %v1832_v5  ;;  %v1109_v26 = vpop.permute.xlu1 %1108 }
 0x746   :  { %1741 = vmatprep.subr.bf16.mxu0 %v1833_v61 }
 0x749   :  { %1742 = vmatpush3.bf16.msra.mxu0 %v1833_v61  ;;  %v1111_v29 = vpop.permute.xlu1 %1110 }
 0x74d   :  { %v1113_v28 = vpop.permute.xlu1 %1112 }
 0x776   :  { %v734_v40 = vpop.xlane.xlu0 %733 }
 0x777   :  { %v746_v16 = vmul.f32 %v734_v40, %v2120_v10 }
 0x779   :  { %v791_v41 = vadd.f32 %v2290_v56, %v746_v16 }
 0x77a   :  { %v740_v24 = vpop.xlane.xlu0 %739 }
 0x77b   :  { %v748_v53 = vmul.f32 %v2118_v9, %v740_v24 }
 0x77d   :  { %v799_v0 = vadd.f32 %v2288_v55, %v748_v53 }
 0x77e   :  { %v743_v23 = vpop.xlane.xlu0 %742 }
 0x77f   :  { %v749_v27 = vmul.f32 %v2122_v11, %v743_v23 }
 0x781   :  { %v802_v22 = vadd.f32 %v2292_v59, %v749_v27 }
 0x78c   :  { %v737_v2 = vpop.xlane.xlu1 %736  ;;  %v1782_v30 = vpop.permute.xlu0 %1781 }
 0x78d   :  { %v747_v31 = vmul.f32 %v737_v2, %v2128_v13  ;;  %v1784_v10 = vunpack.i.h.bf16 %v1782_v30  ;;  %v1783_v57 = vunpack.i.l.bf16 %v1782_v30 }
 0x78f   :  { %v794_v56 = vadd.f32 %v2294_v60, %v747_v31  ;;  %v1205_v9 = vsel %vm473_vm0, %v2235_v36, %v1783_v57  ;;  %v1206_v55 = vsel %vm473_vm0, %v2239_v38, %v1784_v10 }
 0x790   :  { %v1787_v32 = vpop.permute.xlu1 %1786  ;;  %v1209_v11 = vpack.c.bf16 %v1206_v55, %v1205_v9 }
 0x791   :  { %v1789_v33 = vunpack.i.h.bf16 %v1787_v32  ;;  %v1788_v59 = vunpack.i.l.bf16 %v1787_v32 }
 0x792   :  { %1743 = vmatprep.mubr.bf16.mxu0 %v1209_v11 }
 0x793   :  { %v1208_v34 = vsel %vm473_vm0, %v2237_v37, %v1789_v33  ;;  %v1207_v13 = vsel %vm473_vm0, %v2233_v35, %v1788_v59 }
 0x794   :  { %v1210_v25 = vpack.c.bf16 %v1208_v34, %v1207_v13 }
 0x796   :  { %1744 = vmatmul.mubr.bf16.vlgmr.msra.gmra.mrb[20].mxu0 %v1210_v25 }
 0x7ff   :  { %v1725_v60 = vpop.f32.mrb[16].mxu0 }
 0x800   :  { %v1158_v18 = vpop.f32.mrb[17].mxu0  ;;  %v1167_v36 = vadd.f32 %v1725_v60, %v1111_v29 }
 0x801   :  { %v1726_v19 = vpop.f32.mrb[18].mxu0  ;;  %v1159_v38 = vadd.f32 %v1158_v18, %v1107_v39 }
 0x802   :  { %v1170_v20 = vadd.f32 %v1726_v19, %v1113_v28  ;;  %v1161_v12 = vpop.f32.mrb[19].mxu0 }
 0x803   :  { %v1162_v42 = vadd.f32 %v1161_v12, %v1109_v26 }
 0x804   :  { %v1795_v43 = vpack.i.bf16 %v1170_v20, %v1167_v36 }
 0x805   :  { %v1790_v45 = vpack.i.bf16 %v1162_v42, %v1159_v38 }
 0x807   :  { %1791 = vrot.lane.b32.xlu1 %v1790_v45, %s1922_s6 }
 0x80b   :  { %1796 = vrot.lane.b32.xlu1 %v1795_v43, %s1922_s6 }
 0x869   :  { %v1745_v37 = vpop.f32.mrb[20].mxu0 }
 0x86a   :  { %1381 = vst [vmem:[#allocation2 + $0x10] sm:$0xff] %v1745_v37  ;;  %v1293_v21 = vpop.f32.mrb[21].mxu0 }
 0x86b   :  { %1379 = vst [vmem:[#allocation2] sm:$0xff] %v1293_v21  ;;  %v1746_v35 = vpop.f32.mrb[22].mxu0 }
 0x86c   :  { %1382 = vst [vmem:[#allocation2 + $0x18] sm:$0xff] %v1746_v35  ;;  %v1296_v46 = vpop.f32.mrb[23].mxu0 }
 0x86d   :  { %1380 = vst [vmem:[#allocation2 + $0x8] sm:$0xff] %v1296_v46 }
 0x879   :  { %v1792_v51 = vpop.permute.xlu1 %1791 }
 0x87a   :  { %v1794_v44 = vunpack.i.h.bf16 %v1792_v51  ;;  %v1793_v62 = vunpack.i.l.bf16 %v1792_v51 }
 0x87c   :  { %v1324_v7 = vsel %vm473_vm0, %v791_v41, %v1793_v62  ;;  %v1325_v5 = vsel %vm473_vm0, %v794_v56, %v1794_v44 }
 0x87d   :  { %v1797_v61 = vpop.permute.xlu1 %1796  ;;  %v1328_v14 = vpack.c.bf16 %v1325_v5, %v1324_v7 }
 0x87e   :  { %v1799_v47 = vunpack.i.h.bf16 %v1797_v61  ;;  %v1798_v58 = vunpack.i.l.bf16 %v1797_v61 }
 0x87f   :  { %1763 = vmatprep.mubr.bf16.mxu1 %v1328_v14 }
 0x880   :  { %v1327_v3 = vsel %vm473_vm0, %v802_v22, %v1799_v47  ;;  %v1326_v17 = vsel %vm473_vm0, %v799_v0, %v1798_v58 }
 0x881   :  { %v1329_v48 = vpack.c.bf16 %v1327_v3, %v1326_v17 }
 0x883   :  { %1764 = vmatmul.mubr.bf16.vlgmr.msra.gmra.mrb[24].mxu1 %v1329_v48 }
 0x956   :  { %v1765_v49 = vpop.f32.mrb[24].mxu1 }
 0x957   :  { %v1385_v50 = vsub.f32 %v1745_v37, %v1765_v49  ;;  %v1364_v52 = vpop.f32.mrb[25].mxu1 }
 0x958   :  { %v1383_v54 = vsub.f32 %v1293_v21, %v1364_v52  ;;  %v1766_v63 = vpop.f32.mrb[26].mxu1 }
 0x959   :  { %v1386_v1 = vsub.f32 %v1746_v35, %v1766_v63  ;;  %v1367_v4 = vpop.f32.mrb[27].mxu1  ;;  %v1389_v39 = vmul.f32 %v1385_v50, %v1385_v50 }
 0x95a   :  { %v1387_v6 = vmul.f32 %v1383_v54, %v1383_v54  ;;  %v1384_v8 = vsub.f32 %v1296_v46, %v1367_v4 }
 0x95b   :  { %v1390_v40 = vmul.f32 %v1386_v1, %v1386_v1 }
 0x95c   :  { %v1388_v15 = vmul.f32 %v1384_v8, %v1384_v8  ;;  %1391 = vadd.xlane.f32.xlu0 %v1387_v6 }
 0x95e   :  { %1393 = vadd.xlane.f32.xlu1 %v1388_v15 }
 0x960   :  { %1395 = vadd.xlane.f32.xlu0 %v1389_v39 }
 0x964   :  { %1397 = vadd.xlane.f32.xlu0 %v1390_v40 }
 0x965   :  { %1885 = shalt.err (!%p1882_p4)
}
 0x966   :  { %s1886_s7 = scalar_lea.hbm %s2450_s8, 512 }
 0x967   :  { %p1887_p5 = scmp.ne.s32.totalorder %s2450_s8, %s1886_s7  ;;  %p1890_p6 = scmp.lt.u32.totalorder %s1886_s7, %s2450_s8 }
 0x969   :  { %p1892_p7 = pnand %p1890_p6, %p1887_p5 }
 0x96b   :  { %1895 = shalt.err (!%p1892_p7)
}
 0x96c   :  { %s1924_s5 = smov 128   ;;  %s1925_s0 = smov 8   ;;  %vm1438_vm14 = vcmask 0  }
 0x96d   :  { %1451 = dma.vmem_to_hbm [thread:$0]  %s1446_s23, 512, %s2450_s8, [#allocation3], %s1924_s5, %s1924_s5, %s1925_s0  }
 0x96e   :  { %s1926_s8 = smov [#allocation4]  }
 0x96f   :  { %s1458_s29 = sshll.u32 %s1926_s8, 4  ;;  %s1459_s29 = int_to_ptr.vmem [resolvable:$true] %s1458_s29 }
 0x970   :  { %s1896_s30 = scalar_lea.vmem %s1459_s29, 16  ;;  %s1900_s10 = scalar_lea.vmem %s1459_s29, 32 }
 0x971   :  { %p1897_p8 = scmp.ne.s32.totalorder %s1459_s29, %s1896_s30  ;;  %p1901_p9 = scmp.lt.s32.totalorder %s1459_s29, %s1459_s29 }
 0x972   :  { %p1902_p10 = scmp.lt.s32.totalorder %s1900_s10, %s1896_s30 }
 0x974   :  { %p1903_p11 = por %p1902_p10, %p1901_p9 }
 0x976   :  { %p1904_p12 = pnand %p1903_p11, %p1897_p8 }
 0x9e9   :  { %v1392_v16 = vpop.xlane.xlu0 %1391 }
 0x9ea   :  { %1866 = vrsqrt.f32 %v1392_v16  ;;  %vm1401_vm0 = vcmp.eq.f32.partialorder %v1392_v16, inf  ;;  %v1404_v28 = vand.u32 2147483648, %v1392_v16  ;;  %vm1403_vm5 = vcmp.eq.f32.partialorder %v1392_v16, 0.0 }
 0x9eb   :  { %v1394_v41 = vpop.xlane.xlu1 %1393 }
 0x9ec   :  { %1868 = vrsqrt.f32 %v1394_v41  ;;  %vm1408_vm3 = vcmp.eq.f32.partialorder %v1394_v41, inf  ;;  %v1411_v2 = vand.u32 2147483648, %v1394_v41  ;;  %vm1410_vm8 = vcmp.eq.f32.partialorder %v1394_v41, 0.0 }
 0x9ed   :  { %v1396_v24 = vpop.xlane.xlu0 %1395 }
 0x9ee   :  { %1870 = vrsqrt.f32 %v1396_v24  ;;  %vm1415_vm10 = vcmp.eq.f32.partialorder %v1396_v24, inf  ;;  %v1418_v56 = vand.u32 2147483648, %v1396_v24  ;;  %vm1417_vm11 = vcmp.eq.f32.partialorder %v1396_v24, 0.0 }
 0x9f1   :  { %v1398_v53 = vpop.xlane.xlu0 %1397 }
 0x9f2   :  { %1872 = vrsqrt.f32 %v1398_v53  ;;  %vm1422_vm12 = vcmp.eq.f32.partialorder %v1398_v53, inf  ;;  %v1425_v59 = vand.u32 2147483648, %v1398_v53  ;;  %vm1424_vm13 = vcmp.eq.f32.partialorder %v1398_v53, 0.0 }
 0x9f4   :  { %v1867_v26 = vpop.eup %1866 }
 0x9f5   :  { %v1400_v0 = vmul.f32 %v1867_v26, %v1392_v16 }
 0x9f6   :  { %v1869_v23 = vpop.eup %1868 }
 0x9f7   :  { %v1402_v27 = vsel %vm1401_vm0, %v1392_v16, %v1400_v0  ;;  %v1407_v22 = vmul.f32 %v1869_v23, %v1394_v41 }
 0x9f8   :  { %v1871_v29 = vpop.eup %1870  ;;  %v1405_v10 = vsel %vm1403_vm5, %v1404_v28, %v1402_v27 }
 0x9f9   :  { %v1409_v30 = vsel %vm1408_vm3, %v1394_v41, %v1407_v22  ;;  %v1414_v31 = vmul.f32 %v1871_v29, %v1396_v24 }
 0x9fa   :  { %v1412_v57 = vsel %vm1410_vm8, %v1411_v2, %v1409_v30 }
 0x9fb   :  { %v1427_v9 = vadd.f32 %v1412_v57, %v1405_v10  ;;  %v1416_v55 = vsel %vm1415_vm10, %v1396_v24, %v1414_v31 }
 0x9fc   :  { %v1873_v32 = vpop.eup %1872  ;;  %v1419_v11 = vsel %vm1417_vm11, %v1418_v56, %v1416_v55 }
 0x9fd   :  { %v1421_v33 = vmul.f32 %v1873_v32, %v1398_v53  ;;  %v1428_v13 = vadd.f32 %v1427_v9, %v1419_v11 }
 0x9ff   :  { %v1423_v34 = vsel %vm1422_vm12, %v1398_v53, %v1421_v33 }
 0xa00   :  { %v1426_v25 = vsel %vm1424_vm13, %v1425_v59, %v1423_v34 }
 0xa01   :  { %v1429_v60 = vadd.f32 %v1428_v13, %v1426_v25 }
 0xa03   :  { %v1430_v18 = vrot.slane %v1429_v60, 4 }
 0xa05   :  { %v1431_v19 = vadd.f32 %v1430_v18, %v1429_v60 }
 0xa07   :  { %v1432_v36 = vrot.slane %v1431_v19, 2 }
 0xa09   :  { %v1433_v20 = vadd.f32 %v1432_v36, %v1431_v19 }
 0xa0b   :  { %v1434_v12 = vrot.slane %v1433_v20, 1 }
 0xa0d   :  { %v1435_v38 = vadd.f32 %v1434_v12, %v1433_v20 }
 0xa0f   :  { %v1436_v42 = vmul.f32 0.03125, %v1435_v38 }
 0xa11   :  { %v1437_v43 = vmul.f32 0.088388346, %v1436_v42 }
 0xa13   :  { %1439 = vst.msk [vmem:[#allocation4] sm:$0x1] %vm1438_vm14, %v1437_v43 }
 0xa14   :  { %1907 = shalt.err (!%p1904_p12)
}
 0xa15   :  { %s1908_s13 = scalar_lea.hbm %s2451_s9, 16 }
 0xa16   :  { %p1909_p13 = scmp.ne.s32.totalorder %s2451_s9, %s1908_s13  ;;  %p1912_p0 = scmp.lt.u32.totalorder %s1908_s13, %s2451_s9 }
 0xa18   :  { %p1914_p1 = pnand %p1912_p0, %p1909_p13 }
 0xa1a   :  { %1917 = shalt.err (!%p1914_p1)
}
 0xa1b   :  { %1461 = dma.vmem_to_hbm [thread:$0]  %s1459_s29, 16, %s2451_s9, [#allocation5]  }
 0xa1c   :  { %1918 = dma.done.wait [#allocation3], 512  }
 0xa1d   :  { %1919 = vsyncadd [#allocation3], 4294966784 }
 0xa1e   :  { %1920 = dma.done.wait [#allocation5], 16  }
 0xa1f   :  { %1921 = vsyncadd [#allocation5], 4294967280 }
 0xa20   :  { %1468 = vsyncpa [#allocation3], 1 }
 0xa21   :  { %1469 = vsyncpa [#allocation5], 1 }

</bundles_post_ra>
